<compile_context>
chip_gen: v5e
topology: v5e:2x2
jax: 0.10.0
libtpu: 0.0.40
codegen_flags: <defaults>
</compile_context>

<pallas_src>
import jax
import jax.numpy as jnp
from jax.experimental import pallas as pl
from jax.experimental.pallas import tpu as pltpu
import numpy as np


def _round_up(n, m):
    return ((n + m - 1) // m) * m


def mlp_block_kernel(x_ref, w1_ref, b1_ref, w2_ref, b2_ref, o_ref):
    # Linear 1 (MXU, f32 accumulate) + bias + tanh (EUP).
    h = jnp.dot(x_ref[...], w1_ref[...], preferred_element_type=jnp.float32)
    h = jnp.tanh(h + b1_ref[...])
    # Linear 2 + bias + tanh.  Cast hidden to the weight dtype so bf16 weights
    # hit the bf16 MXU path on v6e/v7x; accumulation stays f32.
    y = jnp.dot(h.astype(w2_ref.dtype), w2_ref[...],
                preferred_element_type=jnp.float32)
    y = jnp.tanh(y + b2_ref[...])
    o_ref[...] = y.astype(o_ref.dtype)


def mlp_block(x, w1, b1, w2, b2, *, block_b=128):
    """x: (B, K); w1: (K, H); b1: (1, H); w2: (H, H); b2: (1, H) -> (B, H)."""
    B, K = x.shape
    H = w1.shape[1]

    # Lane-dense padding: last dims become multiples of 128, batch a multiple
    # of the batch tile.  Zero-padding is exact for this block: padded hidden
    # columns evaluate to tanh(0) = 0 and padded W2 rows are zero, so the real
    # output columns are untouched; padded rows/cols are sliced off at the end.
    Kp = max(128, _round_up(K, 128))
    Hp = max(128, _round_up(H, 128))
    Bp = max(block_b, _round_up(B, block_b))

    xp = jnp.pad(x, ((0, Bp - B), (0, Kp - K)))
    w1p = jnp.pad(w1, ((0, Kp - K), (0, Hp - H)))
    b1p = jnp.pad(b1, ((0, 0), (0, Hp - H)))
    w2p = jnp.pad(w2, ((0, Hp - H), (0, Hp - H)))
    b2p = jnp.pad(b2, ((0, 0), (0, Hp - H)))

    grid = (Bp // block_b,)
    itemsize = jnp.dtype(x.dtype).itemsize
    cost = pl.CostEstimate(
        flops=2 * Bp * Kp * Hp + 2 * Bp * Hp * Hp,
        transcendentals=2 * Bp * Hp,
        bytes_accessed=(xp.size + w1p.size + b1p.size + w2p.size + b2p.size
                        + Bp * Hp) * itemsize,
    )

    out = pl.pallas_call(
        mlp_block_kernel,
        out_shape=jax.ShapeDtypeStruct((Bp, Hp), x.dtype),
        grid_spec=pl.GridSpec(
            grid=grid,
            in_specs=[
                # Batch tile walks the grid; weights/biases pinned at block 0
                # so they stay VMEM-resident across all batch tiles.
                pl.BlockSpec((block_b, Kp), lambda i: (i, 0)),
                pl.BlockSpec((Kp, Hp), lambda i: (0, 0)),
                pl.BlockSpec((1, Hp), lambda i: (0, 0)),
                pl.BlockSpec((Hp, Hp), lambda i: (0, 0)),
                pl.BlockSpec((1, Hp), lambda i: (0, 0)),
            ],
            out_specs=pl.BlockSpec((block_b, Hp), lambda i: (i, 0)),
        ),
        compiler_params=pltpu.CompilerParams(
            # Batch tiles are independent -> parallel (uses both TCs on v7x).
            dimension_semantics=("parallel",),
            # Explicit budget; fits comfortably within v7x's 64 MiB VMEM for
            # these shapes (weights would need K/N tiling at H >= ~2048).
            vmem_limit_bytes=64 << 20,
        ),
        cost_estimate=cost,
    )(xp, w1p, b1p, w2p, b2p)

    return out[:B, :H]


def orthogonal_init(key, shape, gain):
    """Deterministic orthogonal init matching torch.nn.init.orthogonal_
    semantics (QR of a gaussian, sign-corrected), scaled by gain."""
    rows, cols = shape
    flat_shape = (rows, cols) if rows >= cols else (cols, rows)
    a = jax.random.normal(key, flat_shape, dtype=jnp.float32)
    q, r = jnp.linalg.qr(a)
    d = jnp.sign(jnp.diag(r))
    q = q * d[None, :]
    if rows < cols:
        q = q.T
    return gain * q[:rows, :cols]


if __name__ == "__main__":
    num_inputs = 32
    output_size = 64
    batch = 256  # two 128-row batch tiles over the grid

    key = jax.random.PRNGKey(0)
    k_x, k_w1, k_w2 = jax.random.split(key, 3)

    gain = float(np.sqrt(2.0))
    # PyTorch Linear weight is (out, in); store transposed (in, out) for the kernel.
    w1_pt = orthogonal_init(k_w1, (output_size, num_inputs), gain)   # (out, in)
    w2_pt = orthogonal_init(k_w2, (output_size, output_size), gain)  # (out, out)
    w1 = jnp.asarray(w1_pt.T, dtype=jnp.float32)   # (num_inputs, output_size)
    w2 = jnp.asarray(w2_pt.T, dtype=jnp.float32)   # (output_size, output_size)
    b1 = jnp.zeros((1, output_size), dtype=jnp.float32)
    b2 = jnp.zeros((1, output_size), dtype=jnp.float32)

    x = jax.random.normal(k_x, (batch, num_inputs), dtype=jnp.float32)

    out = mlp_block(x, w1, b1, w2, b2)
    out = jax.block_until_ready(out)

    # Pure-JAX reference check.
    ref = jnp.tanh(jnp.tanh(x @ w1 + b1) @ w2 + b2)
    np.testing.assert_allclose(np.asarray(out), np.asarray(ref),
                               atol=1e-5, rtol=1e-5)

    print("KERNEL_OK")
</pallas_src>

<mosaic_0001>
module attributes {stable_mosaic.version = 11 : i64} {
  func.func @mlp_block_kernel(%arg0: i32, %arg1: memref<128x128xf32, #tpu.memory_space<vmem>>, %arg2: memref<128x128xf32, #tpu.memory_space<vmem>>, %arg3: memref<1x128xf32, #tpu.memory_space<vmem>>, %arg4: memref<128x128xf32, #tpu.memory_space<vmem>>, %arg5: memref<1x128xf32, #tpu.memory_space<vmem>>, %arg6: memref<128x128xf32, #tpu.memory_space<vmem>>) attributes {dimension_semantics = [#tpu.dimension_semantics<parallel>], iteration_bounds = array<i64: 2>, scalar_prefetch = 0 : i64, scratch_operands = 0 : i64, tpu.core_type = #tpu.core_type<tc>, window_params = [{transform_indices = @transform_0, window_bounds = array<i64: 128, 128>}, {pipeline_mode = #tpu.pipeline_mode<synchronous>, transform_indices = @transform_1, window_bounds = array<i64: 128, 128>}, {pipeline_mode = #tpu.pipeline_mode<synchronous>, transform_indices = @transform_2, window_bounds = array<i64: 1, 128>}, {pipeline_mode = #tpu.pipeline_mode<synchronous>, transform_indices = @transform_3, window_bounds = array<i64: 128, 128>}, {pipeline_mode = #tpu.pipeline_mode<synchronous>, transform_indices = @transform_4, window_bounds = array<i64: 1, 128>}, {transform_indices = @transform_5, window_bounds = array<i64: 128, 128>}]} {
    %c0 = arith.constant 0 : index
    %c0_0 = arith.constant 0 : index
    %0 = vector.load %arg1[%c0, %c0_0] : memref<128x128xf32, #tpu.memory_space<vmem>>, vector<128x128xf32>
    %c0_1 = arith.constant 0 : index
    %c0_2 = arith.constant 0 : index
    %1 = vector.load %arg2[%c0_1, %c0_2] : memref<128x128xf32, #tpu.memory_space<vmem>>, vector<128x128xf32>
    %cst = arith.constant dense<0.000000e+00> : vector<128x128xf32>
    %2 = tpu.matmul %0, %1, %cst {dimension_numbers = #tpu.dot_dimension_numbers<[1], [0], [0], [1], [0, 0, 1, 1], [], []>} : vector<128x128xf32>, vector<128x128xf32>, vector<128x128xf32> -> vector<128x128xf32>
    %c0_3 = arith.constant 0 : index
    %c0_4 = arith.constant 0 : index
    %3 = vector.load %arg3[%c0_3, %c0_4] : memref<1x128xf32, #tpu.memory_space<vmem>>, vector<1x128xf32>
    %4 = vector.broadcast %3 : vector<1x128xf32> to vector<128x128xf32>
    %5 = arith.addf %2, %4 : vector<128x128xf32>
    %6 = math.tanh %5 : vector<128x128xf32>
    %c0_5 = arith.constant 0 : index
    %c0_6 = arith.constant 0 : index
    %7 = vector.load %arg4[%c0_5, %c0_6] : memref<128x128xf32, #tpu.memory_space<vmem>>, vector<128x128xf32>
    %cst_7 = arith.constant dense<0.000000e+00> : vector<128x128xf32>
    %8 = tpu.matmul %6, %7, %cst_7 {dimension_numbers = #tpu.dot_dimension_numbers<[1], [0], [0], [1], [0, 0, 1, 1], [], []>} : vector<128x128xf32>, vector<128x128xf32>, vector<128x128xf32> -> vector<128x128xf32>
    %c0_8 = arith.constant 0 : index
    %c0_9 = arith.constant 0 : index
    %9 = vector.load %arg5[%c0_8, %c0_9] : memref<1x128xf32, #tpu.memory_space<vmem>>, vector<1x128xf32>
    %10 = vector.broadcast %9 : vector<1x128xf32> to vector<128x128xf32>
    %11 = arith.addf %8, %10 : vector<128x128xf32>
    %12 = math.tanh %11 : vector<128x128xf32>
    %c0_10 = arith.constant 0 : index
    %c0_11 = arith.constant 0 : index
    %13 = vector.load %arg6[%c0_10, %c0_11] : memref<128x128xf32, #tpu.memory_space<vmem>>, vector<128x128xf32>
    tpu.vector_store %arg6[%c0_10, %c0_11], %12 {strides = array<i32>} : memref<128x128xf32, #tpu.memory_space<vmem>>, vector<128x128xf32>,
    return
  }
  func.func @transform_0(%arg0: i32) -> (i32, i32) {
    %c0_i32 = arith.constant 0 : i32
    %c0_i32_0 = arith.constant 0 : i32
    return %arg0, %c0_i32 : i32, i32
  }
  func.func @transform_1(%arg0: i32) -> (i32, i32) {
    %c0_i32 = arith.constant 0 : i32
    %c0_i32_0 = arith.constant 0 : i32
    %c0_i32_1 = arith.constant 0 : i32
    return %c0_i32, %c0_i32_0 : i32, i32
  }
  func.func @transform_2(%arg0: i32) -> (i32, i32) {
    %c0_i32 = arith.constant 0 : i32
    %c0_i32_0 = arith.constant 0 : i32
    %c0_i32_1 = arith.constant 0 : i32
    return %c0_i32, %c0_i32_0 : i32, i32
  }
  func.func @transform_3(%arg0: i32) -> (i32, i32) {
    %c0_i32 = arith.constant 0 : i32
    %c0_i32_0 = arith.constant 0 : i32
    %c0_i32_1 = arith.constant 0 : i32
    return %c0_i32, %c0_i32_0 : i32, i32
  }
  func.func @transform_4(%arg0: i32) -> (i32, i32) {
    %c0_i32 = arith.constant 0 : i32
    %c0_i32_0 = arith.constant 0 : i32
    %c0_i32_1 = arith.constant 0 : i32
    return %c0_i32, %c0_i32_0 : i32, i32
  }
  func.func @transform_5(%arg0: i32) -> (i32, i32) {
    %c0_i32 = arith.constant 0 : i32
    %c0_i32_0 = arith.constant 0 : i32
    return %arg0, %c0_i32 : i32, i32
  }
}

</mosaic_0001>

<bundles_post_ra>
// kernel: tpu_custom_call.1
= control target key start
LH: loop header
LB: loop body
LE: loop exit
PB: predicated region body
PF: predicated region fallthrough
CT: control target
= control target key end

     0   :  { %10 = vsyncpa [#allocation3], 0  ;;  %s1242_s0 = inlined_call_operand.hbm [shape: f32[256,128], index: 0, kind: input, shape index: {}]   ;;  %s1243_s1 = inlined_call_operand.hbm [shape: f32[128,128], index: 1, kind: input, shape index: {}]   ;;  %s1244_s2 = inlined_call_operand.vmem [shape: f32[1,128], index: 2, kind: input, shape index: {}]   ;;  %s1245_s3 = inlined_call_operand.hbm [shape: f32[128,128], index: 3, kind: input, shape index: {}]   ;;  %s1246_s4 = inlined_call_operand.vmem [shape: f32[1,128], index: 4, kind: input, shape index: {}]   ;;  %s1247_s5 = inlined_call_operand.hbm [shape: f32[256,128], index: 5, kind: output, shape index: {}]  }
   0x1   :  { %12 = vsyncpa [#allocation3 + $0x1], 0 }
   0x2   :  { %13 = vsyncpa [#allocation6], 0 }
   0x3   :  { %14 = vsyncpa [#allocation4], 0 }
   0x4   :  { %16 = vsyncpa [#allocation4 + $0x1], 0  ;;  %s1009_s18 = smov 0   ;;  %s1011_s19 = smov 0  }
   0x5   :  { %s1013_s20 = smov 0   ;;  %s1015_s21 = smov 0  }
   0x6 LB: > { %s1030_s22 = sadd.s32 4294967295, %s971_s21   ;;  %s622_s23 = sadd.s32 4294967294, %s971_s21   ;;  %s971_s21 = sphi %s1015_s21, %s1259_s21   ;;  %s967_s20 = sphi %s1013_s20, %s1258_s20   ;;  %s963_s19 = sphi %s1011_s19, %s1257_s19   ;;  %s959_s18 = sphi %s1009_s18, %s1256_s18  }
   0x7   : > { %p42_p0 = scmp.ne.s32.totalorder %s963_s19, %s959_s18  ;;  %p43_p1 = scmp.eq.s32.totalorder %s1030_s22, 0 }
   0x8   : > { %p150_p2 = scmp.eq.s32.totalorder %s1030_s22, 1  ;;  %p156_p3 = scmp.eq.s32.totalorder %s622_s23, 1 }
   0x9   : > { %p1039_p4 = por %p43_p1, %p42_p0  ;;  %p623_p5 = scmp.ge.s32.totalorder %s971_s21, 1 }
   0xa   : > { %p1044_p6 = por %p156_p3, %p42_p0  ;;  %p163_p7 = scmp.lt.s32.totalorder %s971_s21, 3 }
   0xb   : > { %s174_s28 = sshll.u32 %s1243_s1, 4  ;;  %s973_s30 = smov [#allocation5]   ;;  %s175_s28 = int_to_ptr.hbm [resolvable:$true] %s174_s28 }
   0xc   : > { %p1052_p8 = pnand %p623_p5, %p163_p7  ;;  %s176_s6 = sshll.u32 %s973_s30, 4  ;;  %s177_s6 = int_to_ptr.vmem [resolvable:$true] %s176_s6 }
   0xd   : > { %s191_s9 = sshll.u32 %s1245_s3, 4  ;;  %s1248_s10 = smov 128   ;;  %s192_s9 = int_to_ptr.hbm [resolvable:$true] %s191_s9 }
   0xe   : > { %p686_p9 = pneg %p1052_p8  ;;  %s975_s11 = smov 8  }
   0xf   : > { %s976_s12 = smov [#allocation7]   ;;  %s1071_s14 = sadd.s32 1, %s971_s21  }
  0x10   : > { %p687_p10 = pnand %p686_p9, %p43_p1  ;;  %s193_s13 = sshll.u32 %s976_s12, 4  ;;  %s194_s13 = int_to_ptr.vmem [resolvable:$true] %s193_s13 }
  0x11   : > { %s29_s15 = sadd.s32 1, %s967_s20  ;;  %s26_s16 = ssub.s32 %s971_s21, %s1071_s14 }
  0x12   : > { %689 = dma.hbm_to_vmem [thread:$0]  (!%p687_p10), %s175_s28, 2048, %s177_s6, [#allocation6], %s1248_s10, %s1248_s10, %s975_s11  }
  0x13   : > { %692 = dma.hbm_to_vmem [thread:$0]  (!%p687_p10), %s192_s9, 2048, %s194_s13, [#allocation6], %s1248_s10, %s1248_s10, %s975_s11  }
  0x14   : > { %p36_p12 = scmp.ne.s32.totalorder %s967_s20, %s963_s19  ;;  %p27_p13 = scmp.eq.s32.totalorder %s26_s16, 0 }
  0x15   : > { %p37_p0 = scmp.eq.s32.totalorder %s971_s21, 0  ;;  %p703_p5 = scmp.lt.s32.totalorder %s971_s21, 2 }
  0x16   : > { %p1081_p3 = por %p150_p2, %p36_p12  ;;  %s210_s26 = sand.u32 1, %s967_s20  }
  0x17   : > { %s1087_s23 = scalar_select %p27_p13, %s967_s20, %s29_s15  }
  0x18   : > { %p38_p7 = por %p37_p0, %p36_p12  ;;  %s627_s27 = sshll.u32 %s210_s26, 7 }
  0x19   : > { %s640_s28 = sshll.u32 %s971_s21, 7  ;;  %s214_s8 = scalar_lea.vmem [#allocation2], %s627_s27 }
  0x1a   : > { %s219_s7 = scalar_lea.hbm %s1242_s0, %s640_s28  ;;  %s222_s9 = sshll.u32 %s214_s8, 4  ;;  %s223_s9 = int_to_ptr.vmem [resolvable:$true] %s222_s9 }
  0x1b   : > { %s220_s12 = sshll.u32 %s219_s7, 4  ;;  %p1094_p2 = pnand %p703_p5, %p38_p7  ;;  %s221_s12 = int_to_ptr.hbm [resolvable:$true] %s220_s12 }
  0x1c   : > { %s211_s15 = scalar_lea.sflag [#allocation3], %s210_s26  ;;  %s871_s16 = sshra.s32 %s221_s12, 4  ;;  %s872_s16 = int_to_ptr.hbm [resolvable:$true] %s871_s16 }
  0x1d   : > { %s873_s10 = scalar_lea.hbm %s872_s16, 128  ;;  %p875_p10 = pneg %p1094_p2 }
  0x1e   : > { %p874_p9 = scmp.ne.s32.totalorder %s872_s16, %s873_s10  ;;  %s878_s30 = scalar_lea.hbm %s1242_s0, 256 }
  0x1f   : > { %p879_p0 = scmp.lt.s32.totalorder %s872_s16, %s1242_s0  ;;  %p880_p5 = scmp.lt.s32.totalorder %s878_s30, %s873_s10 }
  0x20   : > { %p876_p12 = pnand %p875_p10, %p874_p9 }
  0x21   : > { %p881_p7 = por %p880_p5, %p879_p0 }
  0x22   : > { %p877_p13 = pneg %p876_p12 }
  0x24   : > { %p882_p11 = pnand %p881_p7, %p877_p13 }
  0x26   : > { %885 = shalt.err (!%p882_p11)
}
  0x27   : > { %s1254_s26 = smov 128   ;;  %234 = sbr.rel (%p1052_p8) target bundleno = 421 (0x1a5), region = 40 }
  0x28   : > { %696 = dma.hbm_to_vmem [thread:$0]  (!%p1094_p2), %s221_s12, 2048, %s223_s9, %s211_s15, %s1254_s26, %s1254_s26, %s975_s11  }
  0x29   : > { %s1114_s8 = sand.u32 (!%p1052_p8), 1, %s963_s19  }
  0x2a   : > { %s631_s10 = sshll.u32 (!%p1052_p8), %s1114_s8, 7  ;;  %s237_s16 = scalar_lea.sflag (!%p1052_p8), [#allocation3], %s1114_s8 }
  0x2b   : > { %s1120_s28 = scalar_lea.vmem (!%p1052_p8), [#allocation2], %s631_s10 }
  0x2c   : > { %946 = dma.done.wait (%p1039_p4), %s237_s16, 2048  }
  0x2d   : > { %948 = vsyncadd (%p1039_p4), %s237_s16, 4294965248 }
  0x2e   : > { %950 = dma.done.wait (%p43_p1), [#allocation6], 4096  }
  0x2f   : > { %952 = vsyncadd (%p43_p1), [#allocation6], 4294963200  ;;  %v311_v0 = vld [vmem:[#allocation5 + $0x78] sm:$0xff]  ;;  %v310_v1 = vld [vmem:[#allocation5 + $0x70] sm:$0xff]  ;;  %s1176_s12 = scalar_lea.vmem [#allocation8], %s631_s10  ;;  %s641_s13 = sshll.u32 %s1030_s22, 7 }
  0x30   : > { %642 = vmatpush.msra.mxu2 %v311_v0  ;;  %316 = vmatpush.msra.mxu0 %v311_v0  ;;  %v309_v2 = vld [vmem:[#allocation5 + $0x68] sm:$0xff]  ;;  %v308_v3 = vld [vmem:[#allocation5 + $0x60] sm:$0xff]  ;;  %v307_v4 = vld [vmem:[#allocation5 + $0x58] sm:$0xff]  ;;  %s526_s30 = scalar_lea.hbm %s1247_s5, %s641_s13  ;;  %s527_s6 = sshll.u32 %s1176_s12, 4  ;;  %s528_s6 = int_to_ptr.vmem [resolvable:$true] %s527_s6 }
  0x31   : > { %v306_v5 = vld [vmem:[#allocation5 + $0x50] sm:$0xff]  ;;  %v305_v6 = vld [vmem:[#allocation5 + $0x48] sm:$0xff]  ;;  %v304_v7 = vld [vmem:[#allocation5 + $0x40] sm:$0xff]  ;;  %s529_s7 = sshll.u32 %s526_s30, 4  ;;  %s515_s26 = scalar_lea.sflag [#allocation4], %s1114_s8  ;;  %s530_s7 = int_to_ptr.hbm [resolvable:$true] %s529_s7 }
  0x32   : > { %643 = vmatpush.msra.mxu2 %v310_v1  ;;  %317 = vmatpush.msra.mxu0 %v310_v1  ;;  %v303_v8 = vld [vmem:[#allocation5 + $0x38] sm:$0xff]  ;;  %v302_v9 = vld [vmem:[#allocation5 + $0x30] sm:$0xff]  ;;  %v301_v10 = vld [vmem:[#allocation5 + $0x28] sm:$0xff]  ;;  %s915_s10 = sshra.s32 %s530_s7, 4  ;;  %s921_s24 = scalar_lea.hbm %s1247_s5, 256  ;;  %s916_s10 = int_to_ptr.hbm [resolvable:$true] %s915_s10 }
  0x33   : > { %v300_v11 = vld [vmem:[#allocation5 + $0x20] sm:$0xff]  ;;  %v299_v12 = vld [vmem:[#allocation5 + $0x18] sm:$0xff]  ;;  %v298_v13 = vld [vmem:[#allocation5 + $0x10] sm:$0xff]  ;;  %s917_s22 = scalar_lea.hbm %s916_s10, 128  ;;  %p922_p11 = scmp.lt.s32.totalorder %s916_s10, %s1247_s5 }
  0x34   : > { %644 = vmatpush.msra.mxu2 %v309_v2  ;;  %318 = vmatpush.msra.mxu0 %v309_v2  ;;  %v297_v14 = vld [vmem:[#allocation5 + $0x8] sm:$0xff]  ;;  %v296_v15 = vld [vmem:[#allocation5] sm:$0xff]  ;;  %v290_v20 = vld [vmem:[%s1120_s28 + $0x50] sm:$0xff]  ;;  %p918_p1 = scmp.ne.s32.totalorder %s916_s10, %s917_s22  ;;  %p923_p2 = scmp.lt.s32.totalorder %s921_s24, %s917_s22 }
  0x35   : > { %v288_v16 = vld [vmem:[%s1120_s28 + $0x40] sm:$0xff]  ;;  %v289_v18 = vld [vmem:[%s1120_s28 + $0x48] sm:$0xff]  ;;  %v282_v21 = vld [vmem:[%s1120_s28 + $0x10] sm:$0xff] }
  0x36   : > { %645 = vmatpush.msra.mxu2 %v308_v3  ;;  %319 = vmatpush.msra.mxu0 %v308_v3  ;;  %v280_v17 = vld [vmem:[%s1120_s28] sm:$0xff]  ;;  %v281_v19 = vld [vmem:[%s1120_s28 + $0x8] sm:$0xff]  ;;  %v291_v22 = vld [vmem:[%s1120_s28 + $0x58] sm:$0xff]  ;;  %p919_p4 = pnand %p918_p1, %p1081_p3  ;;  %p924_p9 = por %p923_p2, %p922_p11 }
  0x37   : > { %v283_v23 = vld [vmem:[%s1120_s28 + $0x18] sm:$0xff]  ;;  %v411_v25 = vld [vmem:[#allocation7 + $0x70] sm:$0xff]  ;;  %v410_v26 = vld [vmem:[#allocation7 + $0x68] sm:$0xff] }
  0x38   : > { %646 = vmatpush.msra.mxu2 %v307_v4  ;;  %320 = vmatpush.msra.mxu0 %v307_v4  ;;  %v412_v24 = vld [vmem:[#allocation7 + $0x78] sm:$0xff]  ;;  %v409_v27 = vld [vmem:[#allocation7 + $0x60] sm:$0xff]  ;;  %v407_v31 = vld [vmem:[#allocation7 + $0x50] sm:$0xff]  ;;  %p920_p8 = pneg %p919_p4 }
  0x39   : > { %658 = vmatpush.msra.mxu3 %v412_v24  ;;  %417 = vmatpush.msra.mxu1 %v412_v24  ;;  %v292_v28 = vld [vmem:[%s1120_s28 + $0x60] sm:$0xff]  ;;  %v408_v30 = vld [vmem:[#allocation7 + $0x58] sm:$0xff]  ;;  %v406_v32 = vld [vmem:[#allocation7 + $0x48] sm:$0xff] }
  0x3a   : > { %647 = vmatpush.msra.mxu2 %v306_v5  ;;  %321 = vmatpush.msra.mxu0 %v306_v5  ;;  %v284_v29 = vld [vmem:[%s1120_s28 + $0x20] sm:$0xff]  ;;  %v293_v34 = vld [vmem:[%s1120_s28 + $0x68] sm:$0xff]  ;;  %v404_v36 = vld [vmem:[#allocation7 + $0x38] sm:$0xff]  ;;  %p925_p10 = pnand %p924_p9, %p920_p8 }
  0x3b   : > { %659 = vmatpush.msra.mxu3 %v411_v25  ;;  %418 = vmatpush.msra.mxu1 %v411_v25  ;;  %v405_v33 = vld [vmem:[#allocation7 + $0x40] sm:$0xff]  ;;  %v285_v35 = vld [vmem:[%s1120_s28 + $0x28] sm:$0xff]  ;;  %v403_v37 = vld [vmem:[#allocation7 + $0x30] sm:$0xff] }
  0x3c   : > { %648 = vmatpush.msra.mxu2 %v305_v6  ;;  %322 = vmatpush.msra.mxu0 %v305_v6  ;;  %v402_v38 = vld [vmem:[#allocation7 + $0x28] sm:$0xff]  ;;  %v294_v39 = vld [vmem:[%s1120_s28 + $0x70] sm:$0xff]  ;;  %v295_v41 = vld [vmem:[%s1120_s28 + $0x78] sm:$0xff] }
  0x3d   : > { %660 = vmatpush.msra.mxu3 %v410_v26  ;;  %419 = vmatpush.msra.mxu1 %v410_v26  ;;  %v286_v40 = vld [vmem:[%s1120_s28 + $0x30] sm:$0xff]  ;;  %v287_v42 = vld [vmem:[%s1120_s28 + $0x38] sm:$0xff]  ;;  %v401_v43 = vld [vmem:[#allocation7 + $0x20] sm:$0xff] }
  0x3e   : > { %649 = vmatpush.msra.mxu2 %v304_v7  ;;  %323 = vmatpush.msra.mxu0 %v304_v7  ;;  %v400_v44 = vld [vmem:[#allocation7 + $0x18] sm:$0xff]  ;;  %v399_v45 = vld [vmem:[#allocation7 + $0x10] sm:$0xff]  ;;  %v398_v46 = vld [vmem:[#allocation7 + $0x8] sm:$0xff] }
  0x3f   : > { %661 = vmatpush.msra.mxu3 %v409_v27  ;;  %420 = vmatpush.msra.mxu1 %v409_v27  ;;  %v397_v47 = vld [vmem:[#allocation7] sm:$0xff] }
  0x40   : > { %650 = vmatpush.msra.mxu2 %v303_v8  ;;  %324 = vmatpush.msra.mxu0 %v303_v8  ;;  %v1149_v48 = vld [vmem:[%s1244_s2] ss:$0 sm:$0xff] }
  0x41   : > { %662 = vmatpush.msra.mxu3 %v408_v30  ;;  %421 = vmatpush.msra.mxu1 %v408_v30 }
  0x42   : > { %651 = vmatpush.msra.mxu2 %v302_v9  ;;  %325 = vmatpush.msra.mxu0 %v302_v9 }
  0x43   : > { %663 = vmatpush.msra.mxu3 %v407_v31  ;;  %422 = vmatpush.msra.mxu1 %v407_v31 }
  0x44   : > { %652 = vmatpush.msra.mxu2 %v301_v10  ;;  %326 = vmatpush.msra.mxu0 %v301_v10 }
  0x45   : > { %664 = vmatpush.msra.mxu3 %v406_v32  ;;  %423 = vmatpush.msra.mxu1 %v406_v32 }
  0x46   : > { %653 = vmatpush.msra.mxu2 %v300_v11  ;;  %327 = vmatpush.msra.mxu0 %v300_v11 }
  0x47   : > { %665 = vmatpush.msra.mxu3 %v405_v33  ;;  %424 = vmatpush.msra.mxu1 %v405_v33  ;;  %v1170_v33 = vld [vmem:[%s1246_s4] ss:$0 sm:$0xff] }
  0x48   : > { %654 = vmatpush.msra.mxu2 %v299_v12  ;;  %328 = vmatpush.msra.mxu0 %v299_v12 }
  0x49   : > { %666 = vmatpush.msra.mxu3 %v404_v36  ;;  %425 = vmatpush.msra.mxu1 %v404_v36 }
  0x4a   : > { %655 = vmatpush.msra.mxu2 %v298_v13  ;;  %329 = vmatpush.msra.mxu0 %v298_v13 }
  0x4b   : > { %667 = vmatpush.msra.mxu3 %v403_v37  ;;  %426 = vmatpush.msra.mxu1 %v403_v37 }
  0x4c   : > { %656 = vmatpush.msra.mxu2 %v297_v14  ;;  %330 = vmatpush.msra.mxu0 %v297_v14 }
  0x4d   : > { %668 = vmatpush.msra.mxu3 %v402_v38  ;;  %427 = vmatpush.msra.mxu1 %v402_v38 }
  0x4e   : > { %657 = vmatpush.msra.mxu2 %v296_v15  ;;  %331 = vmatpush.msra.mxu0 %v296_v15 }
  0x4f   : > { %356 = vmatmul.f32.vlgmr.msra.gmra.mxu2 %v288_v16  ;;  %332 = vmatmul.f32.vlgmr.msra.gmra.mxu0 %v280_v17 }
  0x50   : > { %669 = vmatpush.msra.mxu3 %v401_v43  ;;  %428 = vmatpush.msra.mxu1 %v401_v43 }
  0x52   : > { %670 = vmatpush.msra.mxu3 %v400_v44  ;;  %429 = vmatpush.msra.mxu1 %v400_v44 }
  0x54   : > { %671 = vmatpush.msra.mxu3 %v399_v45  ;;  %430 = vmatpush.msra.mxu1 %v399_v45 }
  0x56   : > { %672 = vmatpush.msra.mxu3 %v398_v46  ;;  %431 = vmatpush.msra.mxu1 %v398_v46 }
  0x57   : > { %359 = vmatmul.f32.gmra.mxu2 %v289_v18  ;;  %335 = vmatmul.f32.gmra.mxu0 %v281_v19 }
  0x58   : > { %673 = vmatpush.msra.mxu3 %v397_v47  ;;  %432 = vmatpush.msra.mxu1 %v397_v47 }
  0x5f   : > { %362 = vmatmul.f32.gmra.mxu2 %v290_v20  ;;  %338 = vmatmul.f32.gmra.mxu0 %v282_v21 }
  0x67   : > { %365 = vmatmul.f32.gmra.mxu2 %v291_v22  ;;  %341 = vmatmul.f32.gmra.mxu0 %v283_v23 }
  0x6f   : > { %368 = vmatmul.f32.gmra.mxu2 %v292_v28  ;;  %344 = vmatmul.f32.gmra.mxu0 %v284_v29 }
  0x77   : > { %371 = vmatmul.f32.gmra.mxu2 %v293_v34  ;;  %347 = vmatmul.f32.gmra.mxu0 %v285_v35 }
  0x7f   : > { %374 = vmatmul.f32.gmra.mxu2 %v294_v39  ;;  %350 = vmatmul.f32.gmra.mxu0 %v286_v40 }
  0x87   : > { %377 = vmatmul.f32.gmra.mxu2 %v295_v41  ;;  %353 = vmatmul.f32.gmra.mxu0 %v287_v42 }
  0xcc   : > { %v333_v49 = vpop.f32.mrf.mxu0 }
  0xcd   : > { %v334_v50 = vadd.f32 %v1149_v48, %v333_v49 }
  0xcf   : > { %747 = vtanh.f32 %v334_v50 }
  0xd2   : > { %v357_v51 = vpop.f32.mrf.mxu2 }
  0xd3   : > { %v358_v52 = vadd.f32 %v1149_v48, %v357_v51 }
  0xd4   : > { %v336_v53 = vpop.f32.mrf.mxu0 }
  0xd5   : > { %v748_v54 = vpop.eup %747  ;;  %749 = vtanh.f32 %v358_v52  ;;  %v337_v55 = vadd.f32 %v1149_v48, %v336_v53 }
  0xd6   : > { %433 = vmatmul.f32.vlgmr.msra.gmra.mxu1 %v748_v54 }
  0xd7   : > { %751 = vtanh.f32 %v337_v55 }
  0xda   : > { %v360_v56 = vpop.f32.mrf.mxu2 }
  0xdb   : > { %v750_v57 = vpop.eup %749  ;;  %v361_v58 = vadd.f32 %v1149_v48, %v360_v56 }
  0xdc   : > { %457 = vmatmul.f32.vlgmr.msra.gmra.mxu3 %v750_v57  ;;  %v339_v59 = vpop.f32.mrf.mxu0 }
  0xdd   : > { %v752_v60 = vpop.eup %751  ;;  %753 = vtanh.f32 %v361_v58  ;;  %v340_v61 = vadd.f32 %v1149_v48, %v339_v59 }
  0xde   : > { %436 = vmatmul.f32.gmra.mxu1 %v752_v60 }
  0xdf   : > { %755 = vtanh.f32 %v340_v61 }
  0xe2   : > { %v363_v62 = vpop.f32.mrf.mxu2 }
  0xe3   : > { %v754_v63 = vpop.eup %753  ;;  %v364_v0 = vadd.f32 %v1149_v48, %v363_v62 }
  0xe4   : > { %460 = vmatmul.f32.gmra.mxu3 %v754_v63  ;;  %v342_v1 = vpop.f32.mrf.mxu0 }
  0xe5   : > { %v756_v2 = vpop.eup %755  ;;  %757 = vtanh.f32 %v364_v0  ;;  %v343_v3 = vadd.f32 %v1149_v48, %v342_v1 }
  0xe6   : > { %439 = vmatmul.f32.gmra.mxu1 %v756_v2 }
  0xe7   : > { %759 = vtanh.f32 %v343_v3 }
  0xea   : > { %v366_v4 = vpop.f32.mrf.mxu2 }
  0xeb   : > { %v758_v5 = vpop.eup %757  ;;  %v367_v6 = vadd.f32 %v1149_v48, %v366_v4 }
  0xec   : > { %463 = vmatmul.f32.gmra.mxu3 %v758_v5  ;;  %v345_v7 = vpop.f32.mrf.mxu0 }
  0xed   : > { %v760_v8 = vpop.eup %759  ;;  %761 = vtanh.f32 %v367_v6  ;;  %v346_v9 = vadd.f32 %v1149_v48, %v345_v7 }
  0xee   : > { %442 = vmatmul.f32.gmra.mxu1 %v760_v8 }
  0xef   : > { %763 = vtanh.f32 %v346_v9 }
  0xf2   : > { %v369_v10 = vpop.f32.mrf.mxu2 }
  0xf3   : > { %v762_v11 = vpop.eup %761  ;;  %v370_v12 = vadd.f32 %v1149_v48, %v369_v10 }
  0xf4   : > { %466 = vmatmul.f32.gmra.mxu3 %v762_v11  ;;  %v348_v13 = vpop.f32.mrf.mxu0 }
  0xf5   : > { %v764_v14 = vpop.eup %763  ;;  %765 = vtanh.f32 %v370_v12  ;;  %v349_v15 = vadd.f32 %v1149_v48, %v348_v13 }
  0xf6   : > { %445 = vmatmul.f32.gmra.mxu1 %v764_v14 }
  0xf7   : > { %767 = vtanh.f32 %v349_v15 }
  0xfa   : > { %v372_v16 = vpop.f32.mrf.mxu2 }
  0xfb   : > { %v766_v17 = vpop.eup %765  ;;  %v373_v18 = vadd.f32 %v1149_v48, %v372_v16 }
  0xfc   : > { %469 = vmatmul.f32.gmra.mxu3 %v766_v17  ;;  %v351_v19 = vpop.f32.mrf.mxu0 }
  0xfd   : > { %v768_v20 = vpop.eup %767  ;;  %769 = vtanh.f32 %v373_v18  ;;  %v352_v21 = vadd.f32 %v1149_v48, %v351_v19 }
  0xfe   : > { %448 = vmatmul.f32.gmra.mxu1 %v768_v20 }
  0xff   : > { %771 = vtanh.f32 %v352_v21 }
 0x102   : > { %v375_v22 = vpop.f32.mrf.mxu2 }
 0x103   : > { %v770_v23 = vpop.eup %769  ;;  %v376_v24 = vadd.f32 %v1149_v48, %v375_v22 }
 0x104   : > { %472 = vmatmul.f32.gmra.mxu3 %v770_v23  ;;  %v354_v25 = vpop.f32.mrf.mxu0 }
 0x105   : > { %v772_v26 = vpop.eup %771  ;;  %773 = vtanh.f32 %v376_v24  ;;  %v355_v27 = vadd.f32 %v1149_v48, %v354_v25 }
 0x106   : > { %451 = vmatmul.f32.gmra.mxu1 %v772_v26 }
 0x107   : > { %775 = vtanh.f32 %v355_v27 }
 0x10a   : > { %v378_v28 = vpop.f32.mrf.mxu2 }
 0x10b   : > { %v774_v29 = vpop.eup %773  ;;  %v379_v30 = vadd.f32 %v1149_v48, %v378_v28 }
 0x10c   : > { %475 = vmatmul.f32.gmra.mxu3 %v774_v29 }
 0x10d   : > { %v776_v31 = vpop.eup %775  ;;  %777 = vtanh.f32 %v379_v30 }
 0x10e   : > { %454 = vmatmul.f32.gmra.mxu1 %v776_v31 }
 0x113   : > { %v778_v32 = vpop.eup %777 }
 0x114   : > { %478 = vmatmul.f32.gmra.mxu3 %v778_v32 }
 0x153   : > { %v434_v34 = vpop.f32.mrf.mxu1 }
 0x154   : > { %v435_v35 = vadd.f32 %v1170_v33, %v434_v34 }
 0x156   : > { %779 = vtanh.f32 %v435_v35 }
 0x15b   : > { %v437_v36 = vpop.f32.mrf.mxu1 }
 0x15c   : > { %v780_v37 = vpop.eup %779  ;;  %v438_v38 = vadd.f32 %v1170_v33, %v437_v36 }
 0x15d   : > { %498 = vst [vmem:[%s1176_s12] sm:$0xff] %v780_v37 }
 0x15e   : > { %781 = vtanh.f32 %v438_v38 }
 0x15f   : > { %v458_v39 = vpop.f32.mrf.mxu3 }
 0x160   : > { %v459_v40 = vadd.f32 %v1170_v33, %v458_v39 }
 0x162   : > { %783 = vtanh.f32 %v459_v40 }
 0x163   : > { %v440_v41 = vpop.f32.mrf.mxu1 }
 0x164   : > { %v782_v42 = vpop.eup %781  ;;  %v441_v43 = vadd.f32 %v1170_v33, %v440_v41 }
 0x165   : > { %499 = vst [vmem:[%s1176_s12 + $0x8] sm:$0xff] %v782_v42 }
 0x166   : > { %785 = vtanh.f32 %v441_v43 }
 0x167   : > { %v461_v44 = vpop.f32.mrf.mxu3 }
 0x168   : > { %v784_v45 = vpop.eup %783  ;;  %v462_v46 = vadd.f32 %v1170_v33, %v461_v44 }
 0x169   : > { %506 = vst [vmem:[%s1176_s12 + $0x40] sm:$0xff] %v784_v45 }
 0x16a   : > { %787 = vtanh.f32 %v462_v46 }
 0x16b   : > { %v443_v47 = vpop.f32.mrf.mxu1 }
 0x16c   : > { %v786_v48 = vpop.eup %785  ;;  %v444_v49 = vadd.f32 %v1170_v33, %v443_v47 }
 0x16d   : > { %500 = vst [vmem:[%s1176_s12 + $0x10] sm:$0xff] %v786_v48 }
 0x16e   : > { %789 = vtanh.f32 %v444_v49 }
 0x16f   : > { %v464_v50 = vpop.f32.mrf.mxu3 }
 0x170   : > { %v788_v51 = vpop.eup %787  ;;  %v465_v52 = vadd.f32 %v1170_v33, %v464_v50 }
 0x171   : > { %507 = vst [vmem:[%s1176_s12 + $0x48] sm:$0xff] %v788_v51 }
 0x172   : > { %791 = vtanh.f32 %v465_v52 }
 0x173   : > { %v446_v53 = vpop.f32.mrf.mxu1 }
 0x174   : > { %v790_v54 = vpop.eup %789  ;;  %v447_v55 = vadd.f32 %v1170_v33, %v446_v53 }
 0x175   : > { %501 = vst [vmem:[%s1176_s12 + $0x18] sm:$0xff] %v790_v54 }
 0x176   : > { %793 = vtanh.f32 %v447_v55 }
 0x177   : > { %v467_v56 = vpop.f32.mrf.mxu3 }
 0x178   : > { %v792_v57 = vpop.eup %791  ;;  %v468_v58 = vadd.f32 %v1170_v33, %v467_v56 }
 0x179   : > { %508 = vst [vmem:[%s1176_s12 + $0x50] sm:$0xff] %v792_v57 }
 0x17a   : > { %795 = vtanh.f32 %v468_v58 }
 0x17b   : > { %v449_v59 = vpop.f32.mrf.mxu1 }
 0x17c   : > { %v794_v60 = vpop.eup %793  ;;  %v450_v61 = vadd.f32 %v1170_v33, %v449_v59 }
 0x17d   : > { %502 = vst [vmem:[%s1176_s12 + $0x20] sm:$0xff] %v794_v60 }
 0x17e   : > { %797 = vtanh.f32 %v450_v61 }
 0x17f   : > { %v470_v62 = vpop.f32.mrf.mxu3 }
 0x180   : > { %v796_v63 = vpop.eup %795  ;;  %v471_v0 = vadd.f32 %v1170_v33, %v470_v62 }
 0x181   : > { %509 = vst [vmem:[%s1176_s12 + $0x58] sm:$0xff] %v796_v63 }
 0x182   : > { %799 = vtanh.f32 %v471_v0 }
 0x183   : > { %v452_v1 = vpop.f32.mrf.mxu1 }
 0x184   : > { %v798_v2 = vpop.eup %797  ;;  %v453_v3 = vadd.f32 %v1170_v33, %v452_v1 }
 0x185   : > { %503 = vst [vmem:[%s1176_s12 + $0x28] sm:$0xff] %v798_v2 }
 0x186   : > { %801 = vtanh.f32 %v453_v3 }
 0x187   : > { %v473_v4 = vpop.f32.mrf.mxu3 }
 0x188   : > { %v800_v5 = vpop.eup %799  ;;  %v474_v6 = vadd.f32 %v1170_v33, %v473_v4 }
 0x189   : > { %510 = vst [vmem:[%s1176_s12 + $0x60] sm:$0xff] %v800_v5 }
 0x18a   : > { %803 = vtanh.f32 %v474_v6 }
 0x18b   : > { %v455_v7 = vpop.f32.mrf.mxu1 }
 0x18c   : > { %v802_v8 = vpop.eup %801  ;;  %v456_v9 = vadd.f32 %v1170_v33, %v455_v7 }
 0x18d   : > { %504 = vst [vmem:[%s1176_s12 + $0x30] sm:$0xff] %v802_v8 }
 0x18e   : > { %805 = vtanh.f32 %v456_v9 }
 0x18f   : > { %v476_v10 = vpop.f32.mrf.mxu3 }
 0x190   : > { %v804_v11 = vpop.eup %803  ;;  %v477_v12 = vadd.f32 %v1170_v33, %v476_v10 }
 0x191   : > { %511 = vst [vmem:[%s1176_s12 + $0x68] sm:$0xff] %v804_v11 }
 0x192   : > { %807 = vtanh.f32 %v477_v12 }
 0x194   : > { %v806_v13 = vpop.eup %805 }
 0x195   : > { %505 = vst [vmem:[%s1176_s12 + $0x38] sm:$0xff] %v806_v13 }
 0x197   : > { %v479_v14 = vpop.f32.mrf.mxu3 }
 0x198   : > { %v808_v15 = vpop.eup %807  ;;  %v480_v16 = vadd.f32 %v1170_v33, %v479_v14 }
 0x199   : > { %512 = vst [vmem:[%s1176_s12 + $0x70] sm:$0xff] %v808_v15 }
 0x19a   : > { %809 = vtanh.f32 %v480_v16 }
 0x1a0   : > { %v810_v17 = vpop.eup %809 }
 0x1a1   : > { %513 = vst [vmem:[%s1176_s12 + $0x78] sm:$0xff] %v810_v17 }
 0x1a2   : > { %928 = shalt.err (!%p925_p10)
}
 0x1a3   : > { %s977_s8 = smov 128   ;;  %s978_s9 = smov 8  }
 0x1a4   : > { %684 = dma.vmem_to_hbm [thread:$0]  (%p1081_p3), %s528_s6, 2048, %s530_s7, %s515_s26, %s977_s8, %s977_s8, %s978_s9  }
 0x1a5 PF: > { %s544_s12 = sand.u32 1, %s959_s18   ;;  %p1255_p12 = scmp.ge.s32.totalorder %s971_s21, 2 }
 0x1a6   : > { %s545_s13 = scalar_lea.sflag [#allocation4], %s544_s12 }
 0x1a7   : > { %p698_p13 = pnand %p1255_p12, %p1044_p6 }
 0x1a9   : > { %p699_p0 = pneg %p698_p13 }
 0x1ab   : > { %954 = dma.done.wait (%p699_p0), %s545_s13, 2048  }
 0x1ac   : > { %956 = vsyncadd (%p699_p0), %s545_s13, 4294965248  ;;  %p19_p5 = scmp.ge.s32.totalorder %s1071_s14, 4   ;;  %s1256_s18 = smov %s963_s19 }
 0x1ad   : > { %s1257_s19 = smov %s967_s20  ;;  %s1258_s20 = smov %s1087_s23 }
 0x1ae   : > { %s1259_s21 = smov %s1071_s14  ;;  %21 = sbr.rel (!%p19_p5) target bundleno = 6 (0x6), region = 93 }
 0x1b3   :  { %551 = vsyncpa [#allocation3], 1 }
 0x1b4   :  { %553 = vsyncpa [#allocation3 + $0x1], 1 }
 0x1b5   :  { %554 = vsyncpa [#allocation6], 1 }
 0x1b6   :  { %555 = vsyncpa [#allocation4], 1 }
 0x1b7   :  { %557 = vsyncpa [#allocation4 + $0x1], 1 }

</bundles_post_ra>
